<compile_context>
chip_gen: v7x
topology: tpu7x:2x2x1
jax: 0.10.0
libtpu: 0.0.40
codegen_flags: <defaults>
</compile_context>

<pallas_src>
import functools

import jax
import jax.numpy as jnp
from jax.experimental import pallas as pl
from jax.experimental.pallas import tpu as pltpu

LATENT_DIM = 50
HIDDEN = 32
OUTPUT_CHARS = 5
CHAR_SET_SIZE = 26
OUT_DIM = OUTPUT_CHARS * CHAR_SET_SIZE  # 130

DEFAULT_TILE_B = 1024  # rows per grid step


def _round_up(n, m):
    return ((n + m - 1) // m) * m


def _char_mlp_kernel(x_ref, w1_ref, b1_ref, w2_ref, b2_ref, w3_ref, b3_ref, o_ref):
    # x tile (TILE_B, 50) f32 -> bf16 for the MXU; accumulate in f32.
    x = x_ref[...].astype(jnp.bfloat16)
    h1 = jnp.dot(x, w1_ref[...], preferred_element_type=jnp.float32) + b1_ref[...]
    h1 = jnp.maximum(h1, 0.0).astype(jnp.bfloat16)   # ReLU in f32, bf16 for next matmul
    h2 = jnp.dot(h1, w2_ref[...], preferred_element_type=jnp.float32) + b2_ref[...]
    h2 = jnp.maximum(h2, 0.0).astype(jnp.bfloat16)
    o_ref[...] = jnp.dot(h2, w3_ref[...], preferred_element_type=jnp.float32) + b3_ref[...]


@functools.partial(jax.jit, static_argnames=("tile_b", "reshape_output"))
def char_mlp_forward(x, params, *, tile_b=DEFAULT_TILE_B, reshape_output=True):
    """x: (B, LATENT_DIM) float32 -> (B, OUTPUT_CHARS, CHAR_SET_SIZE) float32.

    Set reshape_output=False to get the lane-flat (B, 130) output when the
    consumer can fuse the reshape itself.
    """
    w1, b1, w2, b2, w3, b3 = params
    B = x.shape[0]

    # Batch tile: multiple of 8, shrunk to a single block when B is small.
    tile_b = max(8, min(tile_b, _round_up(B, 8)))
    padded_b = _round_up(B, tile_b)
    if padded_b != B:
        x = jnp.pad(x, ((0, padded_b - B), (0, 0)))
    n_tiles = padded_b // tile_b

    flops = 2 * padded_b * (LATENT_DIM * HIDDEN + HIDDEN * HIDDEN + HIDDEN * OUT_DIM)
    weight_bytes = (LATENT_DIM * HIDDEN + HIDDEN * HIDDEN + HIDDEN * OUT_DIM) * 2 \
                   + (HIDDEN + HIDDEN + OUT_DIM) * 4
    bytes_accessed = padded_b * (LATENT_DIM + OUT_DIM) * 4 + weight_bytes

    out_flat = pl.pallas_call(
        _char_mlp_kernel,
        out_shape=jax.ShapeDtypeStruct((padded_b, OUT_DIM), jnp.float32),
        grid=(n_tiles,),
        in_specs=[
            # Streamed per grid step (double-buffered HBM<->VMEM DMA hides under compute).
            pl.BlockSpec((tile_b, LATENT_DIM), lambda i: (i, 0)),   # x tile (f32)
            # Weights / biases: same block every step -> stay VMEM-resident.
            pl.BlockSpec((LATENT_DIM, HIDDEN), lambda i: (0, 0)),   # w1 (bf16)
            pl.BlockSpec((1, HIDDEN), lambda i: (0, 0)),            # b1 (f32)
            pl.BlockSpec((HIDDEN, HIDDEN), lambda i: (0, 0)),       # w2 (bf16)
            pl.BlockSpec((1, HIDDEN), lambda i: (0, 0)),            # b2 (f32)
            pl.BlockSpec((HIDDEN, OUT_DIM), lambda i: (0, 0)),      # w3 (bf16)
            pl.BlockSpec((1, OUT_DIM), lambda i: (0, 0)),           # b3 (f32)
        ],
        out_specs=pl.BlockSpec((tile_b, OUT_DIM), lambda i: (i, 0)),
        compiler_params=pltpu.CompilerParams(
            dimension_semantics=("parallel",),  # shard batch tiles across TCs on v7x
        ),
        cost_estimate=pl.CostEstimate(
            flops=flops, transcendentals=0, bytes_accessed=bytes_accessed),
    )(x, w1, b1, w2, b2, w3, b3)

    out_flat = out_flat[:B]
    if not reshape_output:
        return out_flat
    # Matches PyTorch's `x.view(-1, 5, 26)` (row-major reshape).
    return out_flat.reshape(-1, OUTPUT_CHARS, CHAR_SET_SIZE)


def init_params(key):
    """Deterministic init mirroring nn.Linear's U(-1/sqrt(fan_in), 1/sqrt(fan_in)).

    Weights stored (in, out) in bf16 (MXU-native); biases kept in f32.
    """
    def linear(key, fan_in, fan_out):
        kw, kb = jax.random.split(key)
        bound = 1.0 / jnp.sqrt(jnp.float32(fan_in))
        w = jax.random.uniform(kw, (fan_in, fan_out), jnp.float32, -bound, bound)
        b = jax.random.uniform(kb, (1, fan_out), jnp.float32, -bound, bound)
        return w.astype(jnp.bfloat16), b

    k1, k2, k3 = jax.random.split(key, 3)
    w1, b1 = linear(k1, LATENT_DIM, HIDDEN)
    w2, b2 = linear(k2, HIDDEN, HIDDEN)
    w3, b3 = linear(k3, HIDDEN, OUT_DIM)
    return (w1, b1, w2, b2, w3, b3)


def _reference(x, params):
    """Pure-JAX reference mirroring the kernel's bf16-matmul / f32-accumulate path."""
    w1, b1, w2, b2, w3, b3 = params
    h1 = jnp.dot(x.astype(jnp.bfloat16), w1, preferred_element_type=jnp.float32) + b1
    h1 = jnp.maximum(h1, 0.0)
    h2 = jnp.dot(h1.astype(jnp.bfloat16), w2, preferred_element_type=jnp.float32) + b2
    h2 = jnp.maximum(h2, 0.0)
    out = jnp.dot(h2.astype(jnp.bfloat16), w3, preferred_element_type=jnp.float32) + b3
    return out.reshape(-1, OUTPUT_CHARS, CHAR_SET_SIZE)


if __name__ == "__main__":
    key = jax.random.PRNGKey(0)
    k_params, k_x = jax.random.split(key)
    params = init_params(k_params)

    batch = 8
    x = jax.random.normal(k_x, (batch, LATENT_DIM), jnp.float32)

    out = char_mlp_forward(x, params)
    out = jax.block_until_ready(out)

    ref = _reference(x, params)
    assert out.shape == (batch, OUTPUT_CHARS, CHAR_SET_SIZE), out.shape
    # bf16 matmul inputs -> loosen tolerance vs an f32-only reference.
    assert jnp.allclose(out, ref, atol=2e-2, rtol=2e-2), "mismatch vs reference"

    # Also exercise a batch that is not a multiple of 8 (padding path).
    x2 = jax.random.normal(jax.random.PRNGKey(1), (13, LATENT_DIM), jnp.float32)
    out2 = jax.block_until_ready(char_mlp_forward(x2, params))
    ref2 = _reference(x2, params)
    assert out2.shape == (13, OUTPUT_CHARS, CHAR_SET_SIZE), out2.shape
    assert jnp.allclose(out2, ref2, atol=2e-2, rtol=2e-2), "mismatch vs reference (padded)"

    print("KERNEL_OK")
</pallas_src>

<mosaic_0001>
module attributes {stable_mosaic.version = 11 : i64} {
  func.func @_char_mlp_kernel(%arg0: i32, %arg1: memref<8x50xf32, #tpu.memory_space<vmem>>, %arg2: memref<50x32xbf16, #tpu.memory_space<vmem>>, %arg3: memref<1x32xf32, #tpu.memory_space<vmem>>, %arg4: memref<32x32xbf16, #tpu.memory_space<vmem>>, %arg5: memref<1x32xf32, #tpu.memory_space<vmem>>, %arg6: memref<32x130xbf16, #tpu.memory_space<vmem>>, %arg7: memref<1x130xf32, #tpu.memory_space<vmem>>, %arg8: memref<8x130xf32, #tpu.memory_space<vmem>>) attributes {dimension_semantics = [#tpu.dimension_semantics<parallel>], iteration_bounds = array<i64: 1>, scalar_prefetch = 0 : i64, scratch_operands = 0 : i64, tpu.core_type = #tpu.core_type<tc>, window_params = [{transform_indices = @transform_0, window_bounds = array<i64: 8, 50>}, {pipeline_mode = #tpu.pipeline_mode<synchronous>, transform_indices = @transform_1, window_bounds = array<i64: 50, 32>}, {pipeline_mode = #tpu.pipeline_mode<synchronous>, transform_indices = @transform_2, window_bounds = array<i64: 1, 32>}, {pipeline_mode = #tpu.pipeline_mode<synchronous>, transform_indices = @transform_3, window_bounds = array<i64: 32, 32>}, {pipeline_mode = #tpu.pipeline_mode<synchronous>, transform_indices = @transform_4, window_bounds = array<i64: 1, 32>}, {pipeline_mode = #tpu.pipeline_mode<synchronous>, transform_indices = @transform_5, window_bounds = array<i64: 32, 130>}, {pipeline_mode = #tpu.pipeline_mode<synchronous>, transform_indices = @transform_6, window_bounds = array<i64: 1, 130>}, {transform_indices = @transform_7, window_bounds = array<i64: 8, 130>}]} {
    %c0 = arith.constant 0 : index
    %c0_0 = arith.constant 0 : index
    %0 = vector.load %arg1[%c0, %c0_0] : memref<8x50xf32, #tpu.memory_space<vmem>>, vector<8x50xf32>
    %1 = arith.truncf %0 : vector<8x50xf32> to vector<8x50xbf16>
    %c0_1 = arith.constant 0 : index
    %c0_2 = arith.constant 0 : index
    %2 = vector.load %arg2[%c0_1, %c0_2] : memref<50x32xbf16, #tpu.memory_space<vmem>>, vector<50x32xbf16>
    %cst = arith.constant dense<0.000000e+00> : vector<8x32xf32>
    %3 = tpu.matmul %1, %2, %cst {dimension_numbers = #tpu.dot_dimension_numbers<[1], [0], [0], [1], [0, 0, 1, 1], [], []>} : vector<8x50xbf16>, vector<50x32xbf16>, vector<8x32xf32> -> vector<8x32xf32>
    %c0_3 = arith.constant 0 : index
    %c0_4 = arith.constant 0 : index
    %4 = vector.load %arg3[%c0_3, %c0_4] : memref<1x32xf32, #tpu.memory_space<vmem>>, vector<1x32xf32>
    %5 = vector.broadcast %4 : vector<1x32xf32> to vector<8x32xf32>
    %6 = arith.addf %3, %5 : vector<8x32xf32>
    %cst_5 = arith.constant 0.000000e+00 : f32
    %7 = vector.broadcast %cst_5 : f32 to vector<8x32xf32>
    %8 = arith.maximumf %6, %7 : vector<8x32xf32>
    %9 = arith.truncf %8 : vector<8x32xf32> to vector<8x32xbf16>
    %c0_6 = arith.constant 0 : index
    %c0_7 = arith.constant 0 : index
    %10 = vector.load %arg4[%c0_6, %c0_7] : memref<32x32xbf16, #tpu.memory_space<vmem>>, vector<32x32xbf16>
    %cst_8 = arith.constant dense<0.000000e+00> : vector<8x32xf32>
    %11 = tpu.matmul %9, %10, %cst_8 {dimension_numbers = #tpu.dot_dimension_numbers<[1], [0], [0], [1], [0, 0, 1, 1], [], []>} : vector<8x32xbf16>, vector<32x32xbf16>, vector<8x32xf32> -> vector<8x32xf32>
    %c0_9 = arith.constant 0 : index
    %c0_10 = arith.constant 0 : index
    %12 = vector.load %arg5[%c0_9, %c0_10] : memref<1x32xf32, #tpu.memory_space<vmem>>, vector<1x32xf32>
    %13 = vector.broadcast %12 : vector<1x32xf32> to vector<8x32xf32>
    %14 = arith.addf %11, %13 : vector<8x32xf32>
    %cst_11 = arith.constant 0.000000e+00 : f32
    %15 = vector.broadcast %cst_11 : f32 to vector<8x32xf32>
    %16 = arith.maximumf %14, %15 : vector<8x32xf32>
    %17 = arith.truncf %16 : vector<8x32xf32> to vector<8x32xbf16>
    %c0_12 = arith.constant 0 : index
    %c0_13 = arith.constant 0 : index
    %18 = vector.load %arg6[%c0_12, %c0_13] : memref<32x130xbf16, #tpu.memory_space<vmem>>, vector<32x130xbf16>
    %cst_14 = arith.constant dense<0.000000e+00> : vector<8x130xf32>
    %19 = tpu.matmul %17, %18, %cst_14 {dimension_numbers = #tpu.dot_dimension_numbers<[1], [0], [0], [1], [0, 0, 1, 1], [], []>} : vector<8x32xbf16>, vector<32x130xbf16>, vector<8x130xf32> -> vector<8x130xf32>
    %c0_15 = arith.constant 0 : index
    %c0_16 = arith.constant 0 : index
    %20 = vector.load %arg7[%c0_15, %c0_16] : memref<1x130xf32, #tpu.memory_space<vmem>>, vector<1x130xf32>
    %21 = vector.broadcast %20 : vector<1x130xf32> to vector<8x130xf32>
    %22 = arith.addf %19, %21 : vector<8x130xf32>
    %c0_17 = arith.constant 0 : index
    %c0_18 = arith.constant 0 : index
    %23 = vector.load %arg8[%c0_17, %c0_18] : memref<8x130xf32, #tpu.memory_space<vmem>>, vector<8x130xf32>
    tpu.vector_store %arg8[%c0_17, %c0_18], %22 {strides = array<i32>} : memref<8x130xf32, #tpu.memory_space<vmem>>, vector<8x130xf32>,
    return
  }
  func.func @transform_0(%arg0: i32) -> (i32, i32) {
    %c0_i32 = arith.constant 0 : i32
    %c0_i32_0 = arith.constant 0 : i32
    return %arg0, %c0_i32 : i32, i32
  }
  func.func @transform_1(%arg0: i32) -> (i32, i32) {
    %c0_i32 = arith.constant 0 : i32
    %c0_i32_0 = arith.constant 0 : i32
    %c0_i32_1 = arith.constant 0 : i32
    return %c0_i32, %c0_i32_0 : i32, i32
  }
  func.func @transform_2(%arg0: i32) -> (i32, i32) {
    %c0_i32 = arith.constant 0 : i32
    %c0_i32_0 = arith.constant 0 : i32
    %c0_i32_1 = arith.constant 0 : i32
    return %c0_i32, %c0_i32_0 : i32, i32
  }
  func.func @transform_3(%arg0: i32) -> (i32, i32) {
    %c0_i32 = arith.constant 0 : i32
    %c0_i32_0 = arith.constant 0 : i32
    %c0_i32_1 = arith.constant 0 : i32
    return %c0_i32, %c0_i32_0 : i32, i32
  }
  func.func @transform_4(%arg0: i32) -> (i32, i32) {
    %c0_i32 = arith.constant 0 : i32
    %c0_i32_0 = arith.constant 0 : i32
    %c0_i32_1 = arith.constant 0 : i32
    return %c0_i32, %c0_i32_0 : i32, i32
  }
  func.func @transform_5(%arg0: i32) -> (i32, i32) {
    %c0_i32 = arith.constant 0 : i32
    %c0_i32_0 = arith.constant 0 : i32
    %c0_i32_1 = arith.constant 0 : i32
    return %c0_i32, %c0_i32_0 : i32, i32
  }
  func.func @transform_6(%arg0: i32) -> (i32, i32) {
    %c0_i32 = arith.constant 0 : i32
    %c0_i32_0 = arith.constant 0 : i32
    %c0_i32_1 = arith.constant 0 : i32
    return %c0_i32, %c0_i32_0 : i32, i32
  }
  func.func @transform_7(%arg0: i32) -> (i32, i32) {
    %c0_i32 = arith.constant 0 : i32
    %c0_i32_0 = arith.constant 0 : i32
    return %arg0, %c0_i32 : i32, i32
  }
}

</mosaic_0001>

<bundles_post_ra>
// kernel: char_mlp_forward.1
= control target key start
LH: loop header
LB: loop body
LE: loop exit
PB: predicated region body
PF: predicated region fallthrough
CT: control target
= control target key end

     0   :  { %v328_v0 = vmov 0.0   ;;  %vm329_vm0 = vmmov 0   ;;  %vm68_vm1 = vcmask 1040384   ;;  %vm64_vm2 = vcmask 408576   ;;  %s421_s1 = inlined_call_operand.vmem [shape: bf16[50,32], index: 1, kind: input, shape index: {}]   ;;  %s422_s0 = inlined_call_operand.vmem [shape: f32[8,50], index: 0, kind: input, shape index: {}]   ;;  %s423_s3 = inlined_call_operand.vmem [shape: bf16[32,32], index: 3, kind: input, shape index: {}]   ;;  %s424_s5 = inlined_call_operand.vmem [shape: bf16[32,130], index: 5, kind: input, shape index: {}]   ;;  %s425_s2 = inlined_call_operand.vmem [shape: f32[1,32], index: 2, kind: input, shape index: {}]   ;;  %s426_s4 = inlined_call_operand.vmem [shape: f32[1,32], index: 4, kind: input, shape index: {}]   ;;  %s427_s6 = inlined_call_operand.vmem [shape: f32[1,130], index: 6, kind: input, shape index: {}]   ;;  %s428_s7 = inlined_call_operand.vmem [shape: f32[8,130], index: 7, kind: output, shape index: {}]  }
   0x1   :  { %293 = vmatprep.subr.bf16.mxu0 %v328_v0  ;;  %v316_v1 = vld [vmem:[%s421_s1] sm:$0xff]   ;;  %301 = vmatprep.mubr.msk.bf16.mxu0 %vm329_vm0, %v328_v0  ;;  %v317_v2 = vld [vmem:[%s421_s1 + $0x8] sm:$0xff]   ;;  %v318_v3 = vld [vmem:[%s421_s1 + $0x10] sm:$0xff]   ;;  %vm137_vm3 = vcmask 261120   ;;  %v330_v22 = vmov 0   ;;  %v189_v31 = vlaneseq  ;;  %vm264_vm4 = vcmask 15360  }
   0x2   :  { %305 = vmatprep.subr.bf16.mxu1 %v328_v0  ;;  %309 = vmatprep.mubr.msk.bf16.mxu1 %vm329_vm0, %v328_v0  ;;  %v319_v4 = vld [vmem:[%s421_s1 + $0x18] ss:$0 sps:$4 sm:$0x11]   ;;  %v27_v5 = vld [vmem:[%s422_s0] sm:$0xff]  ;;  %v321_v9 = vld [vmem:[%s423_s3 + $0x8] sm:$0xff]  }
   0x3   :  { %294 = vmatpush3.bf16.msra.mxu0 %v316_v1  ;;  %v70_v6 = vsel %vm68_vm1, %v319_v4, 0  ;;  %v28_v7 = vpack.c.bf16 %v27_v5, %v27_v5  ;;  %v320_v8 = vld [vmem:[%s423_s3] sm:$0xff]   ;;  %v327_v20 = vld [vmem:[%s424_s5 + $0x14] ss:$8 sps:$4 sm:$0xff]   ;;  %v325_v21 = vld [vmem:[%s424_s5 + $0x10] ss:$8 sps:$4 sm:$0xff]  }
   0x4   :  { %295 = vmatprep.subr.bf16.mxu0 %v328_v0  ;;  %306 = vmatpush3.bf16.msra.mxu1 %v320_v8  ;;  %v324_v10 = vld [vmem:[%s424_s5 + $0x4] ss:$8 sps:$4 sm:$0xff]   ;;  %v270_v11 = vld [vmem:[%s425_s2] ss:$0 sm:$0xff]  ;;  %v190_v32 = vshrl.u32 %v189_v31, 7 }
   0x5   :  { %307 = vmatprep.subr.bf16.mxu1 %v328_v0  ;;  %v322_v18 = vld [vmem:[%s424_s5] ss:$8 sps:$4 sm:$0xff]  }
   0x6   :  { %v276_v23 = vld [vmem:[%s426_s4] ss:$0 sm:$0xff]  ;;  %v191_v33 = vsub.s32 0, %v190_v32  ;;  %v195_v35 = vsub.s32 1, %v190_v32 }
   0x7   :  { %296 = vmatpush3.bf16.msra.mxu0 %v317_v2  ;;  %v187_v34 = vld [vmem:[%s427_s6] sm:$0x3] }
   0x8   :  { %297 = vmatprep.subr.bf16.mxu0 %v328_v0  ;;  %308 = vmatpush3.bf16.msra.mxu1 %v321_v9  ;;  %v192_v36 = vrot.slane %v187_v34, %v191_v33  ;;  %v196_v37 = vrot.slane %v187_v34, %v195_v35 }
   0x9   :  { %222 = vmatprep.subr.bf16.mxu1 %v324_v10 }
   0xb   :  { %298 = vmatpush3.bf16.msra.mxu0 %v318_v3 }
   0xc   :  { %299 = vmatprep.subr.bf16.mxu0 %v328_v0 }
   0xf   :  { %300 = vmatpush3.bf16.msra.mxu0 %v70_v6 }
  0x12   :  { %302 = vmatmul.mubr.msk.bf16.vlgmr.msra.gmra.mrb[0].mxu0 %vm64_vm2, %v28_v7 }
  0xe5   :  { %v106_v12 = vpop.f32.mrb[0].mxu0 }
  0xe6   :  { %v107_v13 = vadd.f32 %v270_v11, %v106_v12  ;;  %v303_v14 = vpop.f32.mrb[1].mxu0 }
  0xe7   :  { %v109_v15 = vpop.f32.mrb[2].mxu0 }
  0xe8   :  { %v112_v16 = vmax.f32 %v107_v13, 0.0  ;;  %v304_v17 = vpop.f32.mrb[3].mxu0 }
  0xea   :  { %v113_v19 = vpack.c.bf16 %v112_v16, %v112_v16 }
  0xec   :  { %310 = vmatmul.mubr.msk.bf16.vlgmr.msra.gmra.mrb[0].mxu1 %vm137_vm3, %v113_v19 }
  0xed   :  { %223 = vmatpush1.bf16.msra.mxu1 %v322_v18  ;;  %254 = vmatprep.mubr.bf16.mxu1 %v330_v22 }
  0xee   :  { %224 = vmatprep.subr.bf16.mxu1 %v327_v20 }
  0xf1   :  { %225 = vmatpush1.bf16.msra.mxu1 %v325_v21 }
 0x1bf   :  { %v175_v24 = vpop.f32.mrb[0].mxu1 }
 0x1c0   :  { %v176_v25 = vadd.f32 %v276_v23, %v175_v24  ;;  %v311_v26 = vpop.f32.mrb[1].mxu1 }
 0x1c1   :  { %v178_v27 = vpop.f32.mrb[2].mxu1 }
 0x1c2   :  { %v181_v28 = vmax.f32 %v176_v25, 0.0  ;;  %v312_v29 = vpop.f32.mrb[3].mxu1 }
 0x1c4   :  { %v182_v30 = vpack.c.bf16 %v181_v28, %v181_v28 }
 0x1c6   :  { %284 = vmatmul.mubr.msk.bf16.vlgmr.msra.gmra.mrb[4].mxu1 %vm137_vm3, %v182_v30 }
 0x299   :  { %v256_v38 = vpop.f32.mrb[4].mxu1 }
 0x29a   :  { %v257_v39 = vadd.f32 %v256_v38, %v192_v36  ;;  %v258_v40 = vpop.f32.mrb[5].mxu1 }
 0x29b   :  { %v259_v41 = vadd.f32 %v258_v40, %v196_v37  ;;  %v260_v42 = vpop.f32.mrb[6].mxu1 }
 0x29c   :  { %263 = vst [vmem:[%s428_s7] sm:$0xff] %v257_v39  ;;  %v261_v43 = vpop.f32.mrb[7].mxu1 }
 0x29d   :  { %265 = vst.msk [vmem:[%s428_s7 + $0x8] sm:$0xff] %vm264_vm4, %v259_v41 }

</bundles_post_ra>
